<compile_context>
chip_gen: v5e
topology: v5e:2x2
jax: 0.10.0
libtpu: 0.0.40
codegen_flags: <defaults>
</compile_context>

<pallas_src>
import functools

import jax
import jax.numpy as jnp
from jax.experimental import pallas as pl
from jax.experimental.pallas import tpu as pltpu

_EPS = 1e-10  # matches the + 1e-10 in the PyTorch module


def _pocket_center_kernel(packed_ref, loss_ref, acc_ref, *,
                          d, num_rows, n_nodes, tile_n, threshold_sum):
    # packed_ref : (d+4, TILE_N) VMEM f32 rows = [pos_x..pos_z, ones, pred, target, batch]
    # loss_ref   : (1, 1) VMEM f32 scalar output
    # acc_ref    : (2*num_rows, d+1) resident VMEM accumulator
    #              rows [0, num_rows)        -> target sums (+ count in last col)
    #              rows [num_rows, 2*num_rows) -> pred-weighted sums (+ mass in last col)
    i = pl.program_id(0)

    @pl.when(i == 0)
    def _():
        acc_ref[...] = jnp.zeros_like(acc_ref)

    def accumulate(mask_tail):
        pos_aug = packed_ref[0:d + 1, :]                       # (d+1, T): coords + ones row
        pred = packed_ref[d + 1:d + 2, :]                      # (1, T)
        tgt = packed_ref[d + 2:d + 3, :]                       # (1, T)
        bidx = packed_ref[d + 3:d + 4, :].astype(jnp.int32)    # (1, T) graph ids

        tgt_w = jnp.where(tgt == 1.0, 1.0, 0.0)                # (1, T)
        if threshold_sum:
            prd_w = jnp.where(pred > 0.5, 1.0, 1e-10)
        else:
            prd_w = pred

        if mask_tail:
            col = jax.lax.broadcasted_iota(jnp.int32, (1, tile_n), 1) + i * tile_n
            valid = col < n_nodes                              # (1, T)
            tgt_w = jnp.where(valid, tgt_w, 0.0)
            prd_w = jnp.where(valid, prd_w, 0.0)
            # NaN-safe: padded lanes may hold garbage; zero coords via select
            # (0 * NaN would still be NaN).
            pos_aug = jnp.where(valid, pos_aug, 0.0)

        # Stacked one-hot weights over graph ids: top half = target mask,
        # bottom half = pred weights.  (2*num_rows, T)
        rows = jax.lax.broadcasted_iota(jnp.int32, (2 * num_rows, tile_n), 0)
        w = (jnp.where(rows == bidx, tgt_w, 0.0)
             + jnp.where(rows == bidx + num_rows, prd_w, 0.0))

        # Single MXU contraction over the node (lane) axis of both operands:
        # (2R, T) x (d+1, T) -> (2R, d+1).  The ones row folds counts / pred
        # mass into the last output column (no separate XLU reductions).
        acc_ref[...] += jax.lax.dot_general(
            w, pos_aug,
            dimension_numbers=(((1,), (1,)), ((), ())),
            preferred_element_type=jnp.float32)

    has_tail = (n_nodes % tile_n) != 0
    if has_tail:
        last = pl.num_programs(0) - 1

        @pl.when(i != last)
        def _():
            accumulate(mask_tail=False)

        @pl.when(i == last)
        def _():
            accumulate(mask_tail=True)
    else:
        accumulate(mask_tail=False)

    @pl.when(i == pl.num_programs(0) - 1)
    def _():
        acc = acc_ref[...]                                     # (2R, d+1)
        centers = acc[:, 0:d] / (acc[:, d:d + 1] + _EPS)       # (2R, d)
        diff = centers[0:num_rows, :] - centers[num_rows:, :]  # (R, d); pad rows are 0
        ss = jnp.sum(diff * diff, axis=1, keepdims=True)       # (R, 1)
        total = jnp.sum(ss, axis=0, keepdims=True)             # (1, 1)
        loss_ref[...] = jnp.sqrt(total)


def pocket_center_loss(pred, target, batch, pos, *, num_graphs=None,
                       threshold_sum=False, tile_n=4096):
    """Pallas implementation of PocketCenterLoss.forward.

    Args:
      pred:   [N] per-node prediction.
      target: [N] per-node label (1 marks pocket nodes).
      batch:  [N] graph id per node (contiguous ids 0..num_graphs-1).
      pos:    [N, 3] node coordinates.
      num_graphs: static number of graphs; REQUIRED under jit (the None
        fallback does a host-side max and fails on traced inputs).
    Returns:
      scalar loss (float32).
    """
    n = pred.shape[0]
    d = pos.shape[1]
    assert target.shape[0] == n and batch.shape[0] == n and pos.shape[0] == n

    if num_graphs is None:
        # Host-side fallback only (breaks under jit) — pass num_graphs statically.
        num_graphs = int(jax.device_get(jnp.max(batch))) + 1
    num_rows = max(8, ((num_graphs + 7) // 8) * 8)  # sublane-aligned accumulator rows

    # Tile selection: largest 128-multiple bounded by the request, by N, and by
    # a ~256 KiB budget on the (2*num_rows, tile) f32 one-hot temporary so it
    # does not spill hard enough to turn the kernel store-bound.
    onehot_budget_bytes = 256 * 1024
    max_tile = max(256, onehot_budget_bytes // (4 * 2 * num_rows))
    tile = min(int(tile_n), n, max_tile)
    if tile < n:
        tile = max(128, (tile // 128) * 128)
    grid = pl.cdiv(n, tile)

    # One-time lane-dense packing (single contiguous block -> one DMA per step).
    packed = jnp.concatenate([
        pos.astype(jnp.float32).T,                       # (d, N)
        jnp.ones((1, n), jnp.float32),                   # ones row -> counts/mass via MXU
        pred.astype(jnp.float32).reshape(1, n),
        target.astype(jnp.float32).reshape(1, n),
        batch.astype(jnp.float32).reshape(1, n),         # ids exact in f32 (< 2^24)
    ], axis=0)                                           # (d+4, N)

    kernel = functools.partial(
        _pocket_center_kernel,
        d=d, num_rows=num_rows, n_nodes=n, tile_n=tile,
        threshold_sum=bool(threshold_sum))

    loss = pl.pallas_call(
        kernel,
        out_shape=jax.ShapeDtypeStruct((1, 1), jnp.float32),
        grid_spec=pltpu.PrefetchScalarGridSpec(
            num_scalar_prefetch=0,
            grid=(grid,),
            in_specs=[pl.BlockSpec((d + 4, tile), lambda i: (0, i))],
            out_specs=pl.BlockSpec((1, 1), lambda i: (0, 0)),
            scratch_shapes=[
                pltpu.VMEM((2 * num_rows, d + 1), jnp.float32),  # fused accumulator
            ],
        ),
        compiler_params=pltpu.CompilerParams(
            dimension_semantics=("arbitrary",)),  # grid axis carries the accumulator
    )(packed)

    return loss[0, 0]


def _reference(pred, target, batch, pos, num_graphs, threshold_sum=False):
    # Pure-JAX mirror of the PyTorch forward.
    tmask = (target == 1).astype(jnp.float32)
    tgt_sum = jax.ops.segment_sum(pos * tmask[:, None], batch, num_segments=num_graphs)
    cnt = jax.ops.segment_sum(tmask, batch, num_segments=num_graphs)
    target_center = tgt_sum / (cnt[:, None] + _EPS)
    w = jnp.where(pred > 0.5, 1.0, 1e-10) if threshold_sum else pred
    prd_sum = jax.ops.segment_sum(pos * w[:, None], batch, num_segments=num_graphs)
    den = jax.ops.segment_sum(w, batch, num_segments=num_graphs)
    pred_center = prd_sum / (den[:, None] + _EPS)
    diff = target_center - pred_center
    return jnp.sqrt(jnp.sum(diff * diff))


if __name__ == "__main__":
    key = jax.random.PRNGKey(0)
    k1, k2, k3 = jax.random.split(key, 3)

    num_graphs = 4
    n_nodes = 600          # not a multiple of the small tile -> exercises the masked tail

    pos = jax.random.normal(k1, (n_nodes, 3), dtype=jnp.float32) * 5.0
    target = (jax.random.uniform(k2, (n_nodes,)) > 0.7).astype(jnp.float32)
    pred = jax.random.uniform(k3, (n_nodes,), dtype=jnp.float32)
    batch = jnp.repeat(jnp.arange(num_graphs, dtype=jnp.int32),
                       n_nodes // num_graphs)

    ok = True
    # (threshold_sum, tile_n): multi-step grid w/ masked tail, and the default
    # single-full-block path.
    for thr, t in ((False, 256), (True, 256), (False, 4096)):
        loss = pocket_center_loss(pred, target, batch, pos,
                                  num_graphs=num_graphs,
                                  threshold_sum=thr, tile_n=t)
        loss = jax.block_until_ready(loss)
        ref = _reference(pred, target, batch, pos, num_graphs, threshold_sum=thr)
        ok = ok and bool(jnp.allclose(loss, ref, atol=1e-4, rtol=1e-4))

    assert ok, "loss mismatch vs pure-JAX reference"
    print("KERNEL_OK")
</pallas_src>

<mosaic_0001>
module attributes {stable_mosaic.version = 11 : i64} {
  func.func @_pocket_center_kernel(%arg0: i32, %arg1: memref<7x256xf32, #tpu.memory_space<vmem>>, %arg2: memref<1x1xf32, #tpu.memory_space<vmem>>, %arg3: memref<16x4xf32, #tpu.memory_space<vmem>>) attributes {dimension_semantics = [#tpu.dimension_semantics<arbitrary>], iteration_bounds = array<i64: 3>, scalar_prefetch = 0 : i64, scratch_operands = 1 : i64, tpu.core_type = #tpu.core_type<tc>, window_params = [{transform_indices = @transform_0, window_bounds = array<i64: 7, 256>}, {pipeline_mode = #tpu.pipeline_mode<synchronous>, transform_indices = @transform_1, window_bounds = array<i64: 1, 1>}]} {
    %c0_i32 = arith.constant 0 : i32
    %0 = arith.cmpi eq, %arg0, %c0_i32 : i32
    %1 = arith.extui %0 : i1 to i32
    %c0_i32_0 = arith.constant 0 : i32
    %2 = arith.cmpi ne, %1, %c0_i32_0 : i32
    scf.if %2 {
      %cst = arith.constant 0.000000e+00 : f32
      %12 = vector.broadcast %cst : f32 to vector<16x4xf32>
      %c0 = arith.constant 0 : index
      %c0_6 = arith.constant 0 : index
      %13 = vector.load %arg3[%c0, %c0_6] : memref<16x4xf32, #tpu.memory_space<vmem>>, vector<16x4xf32>
      tpu.vector_store %arg3[%c0, %c0_6], %12 {strides = array<i32>} : memref<16x4xf32, #tpu.memory_space<vmem>>, vector<16x4xf32>,
    } else {
    }
    %c2_i32 = arith.constant 2 : i32
    %3 = arith.cmpi ne, %arg0, %c2_i32 : i32
    %4 = arith.extui %3 : i1 to i32
    %c0_i32_1 = arith.constant 0 : i32
    %5 = arith.cmpi ne, %4, %c0_i32_1 : i32
    scf.if %5 {
      %c0 = arith.constant 0 : index
      %c0_6 = arith.constant 0 : index
      %12 = vector.load %arg1[%c0, %c0_6] : memref<7x256xf32, #tpu.memory_space<vmem>>, vector<4x256xf32>
      %c4 = arith.constant 4 : index
      %c0_7 = arith.constant 0 : index
      %13 = vector.load %arg1[%c4, %c0_7] : memref<7x256xf32, #tpu.memory_space<vmem>>, vector<1x256xf32>
      %c5 = arith.constant 5 : index
      %c0_8 = arith.constant 0 : index
      %14 = vector.load %arg1[%c5, %c0_8] : memref<7x256xf32, #tpu.memory_space<vmem>>, vector<1x256xf32>
      %c6 = arith.constant 6 : index
      %c0_9 = arith.constant 0 : index
      %15 = vector.load %arg1[%c6, %c0_9] : memref<7x256xf32, #tpu.memory_space<vmem>>, vector<1x256xf32>
      %16 = arith.fptosi %15 : vector<1x256xf32> to vector<1x256xi32>
      %cst = arith.constant 1.000000e+00 : f32
      %17 = vector.broadcast %cst : f32 to vector<1x256xf32>
      %18 = arith.cmpf oeq, %14, %17 : vector<1x256xf32>
      %cst_10 = arith.constant 1.000000e+00 : f32
      %cst_11 = arith.constant 0.000000e+00 : f32
      %19 = vector.broadcast %cst_10 : f32 to vector<1x256xf32>
      %20 = vector.broadcast %cst_11 : f32 to vector<1x256xf32>
      %21 = arith.select %18, %19, %20 : vector<1x256xi1>, vector<1x256xf32>
      %22 = tpu.iota {dimensions = array<i32: 0>} : vector<16x256xi32>
      %23 = vector.broadcast %16 : vector<1x256xi32> to vector<16x256xi32>
      %24 = arith.cmpi eq, %22, %23 : vector<16x256xi32>
      %cst_12 = arith.constant 0.000000e+00 : f32
      %25 = vector.shape_cast %21 : vector<1x256xf32> to vector<1x256xf32>
      %26 = vector.broadcast %25 : vector<1x256xf32> to vector<16x256xf32>
      %27 = vector.broadcast %cst_12 : f32 to vector<16x256xf32>
      %28 = arith.select %24, %26, %27 : vector<16x256xi1>, vector<16x256xf32>
      %c8_i32 = arith.constant 8 : i32
      %29 = vector.broadcast %c8_i32 : i32 to vector<1x256xi32>
      %30 = arith.addi %16, %29 : vector<1x256xi32>
      %31 = vector.broadcast %30 : vector<1x256xi32> to vector<16x256xi32>
      %32 = arith.cmpi eq, %22, %31 : vector<16x256xi32>
      %cst_13 = arith.constant 0.000000e+00 : f32
      %33 = vector.shape_cast %13 : vector<1x256xf32> to vector<1x256xf32>
      %34 = vector.broadcast %33 : vector<1x256xf32> to vector<16x256xf32>
      %35 = vector.broadcast %cst_13 : f32 to vector<16x256xf32>
      %36 = arith.select %32, %34, %35 : vector<16x256xi1>, vector<16x256xf32>
      %37 = arith.addf %28, %36 : vector<16x256xf32>
      %c0_14 = arith.constant 0 : index
      %c0_15 = arith.constant 0 : index
      %38 = vector.load %arg3[%c0_14, %c0_15] : memref<16x4xf32, #tpu.memory_space<vmem>>, vector<16x4xf32>
      %cst_16 = arith.constant dense<0.000000e+00> : vector<16x4xf32>
      %39 = tpu.matmul %37, %12, %cst_16 {dimension_numbers = #tpu.dot_dimension_numbers<[1], [1], [0], [0], [0, 0, 1, 0], [], []>} : vector<16x256xf32>, vector<4x256xf32>, vector<16x4xf32> -> vector<16x4xf32>
      %40 = arith.addf %38, %39 : vector<16x4xf32>
      %c0_17 = arith.constant 0 : index
      %c0_18 = arith.constant 0 : index
      %41 = vector.load %arg3[%c0_17, %c0_18] : memref<16x4xf32, #tpu.memory_space<vmem>>, vector<16x4xf32>
      tpu.vector_store %arg3[%c0_17, %c0_18], %40 {strides = array<i32>} : memref<16x4xf32, #tpu.memory_space<vmem>>, vector<16x4xf32>,
    } else {
    }
    %c2_i32_2 = arith.constant 2 : i32
    %6 = arith.cmpi eq, %arg0, %c2_i32_2 : i32
    %7 = arith.extui %6 : i1 to i32
    %c0_i32_3 = arith.constant 0 : i32
    %8 = arith.cmpi ne, %7, %c0_i32_3 : i32
    scf.if %8 {
      %c0 = arith.constant 0 : index
      %c0_6 = arith.constant 0 : index
      %12 = vector.load %arg1[%c0, %c0_6] : memref<7x256xf32, #tpu.memory_space<vmem>>, vector<4x256xf32>
      %c4 = arith.constant 4 : index
      %c0_7 = arith.constant 0 : index
      %13 = vector.load %arg1[%c4, %c0_7] : memref<7x256xf32, #tpu.memory_space<vmem>>, vector<1x256xf32>
      %c5 = arith.constant 5 : index
      %c0_8 = arith.constant 0 : index
      %14 = vector.load %arg1[%c5, %c0_8] : memref<7x256xf32, #tpu.memory_space<vmem>>, vector<1x256xf32>
      %c6 = arith.constant 6 : index
      %c0_9 = arith.constant 0 : index
      %15 = vector.load %arg1[%c6, %c0_9] : memref<7x256xf32, #tpu.memory_space<vmem>>, vector<1x256xf32>
      %16 = arith.fptosi %15 : vector<1x256xf32> to vector<1x256xi32>
      %cst = arith.constant 1.000000e+00 : f32
      %17 = vector.broadcast %cst : f32 to vector<1x256xf32>
      %18 = arith.cmpf oeq, %14, %17 : vector<1x256xf32>
      %cst_10 = arith.constant 1.000000e+00 : f32
      %cst_11 = arith.constant 0.000000e+00 : f32
      %19 = vector.broadcast %cst_10 : f32 to vector<1x256xf32>
      %20 = vector.broadcast %cst_11 : f32 to vector<1x256xf32>
      %21 = arith.select %18, %19, %20 : vector<1x256xi1>, vector<1x256xf32>
      %22 = tpu.iota {dimensions = array<i32: 1>} : vector<1x256xi32>
      %c256_i32 = arith.constant 256 : i32
      %23 = arith.muli %arg0, %c256_i32 : i32
      %24 = vector.broadcast %23 : i32 to vector<1x256xi32>
      %25 = arith.addi %22, %24 : vector<1x256xi32>
      %c600_i32 = arith.constant 600 : i32
      %26 = vector.broadcast %c600_i32 : i32 to vector<1x256xi32>
      %27 = arith.cmpi slt, %25, %26 : vector<1x256xi32>
      %cst_12 = arith.constant 0.000000e+00 : f32
      %28 = vector.broadcast %cst_12 : f32 to vector<1x256xf32>
      %29 = arith.select %27, %21, %28 : vector<1x256xi1>, vector<1x256xf32>
      %cst_13 = arith.constant 0.000000e+00 : f32
      %30 = vector.broadcast %cst_13 : f32 to vector<1x256xf32>
      %31 = arith.select %27, %13, %30 : vector<1x256xi1>, vector<1x256xf32>
      %cst_14 = arith.constant 0.000000e+00 : f32
      %32 = vector.shape_cast %27 : vector<1x256xi1> to vector<1x256xi1>
      %33 = vector.broadcast %32 : vector<1x256xi1> to vector<4x256xi1>
      %34 = vector.broadcast %cst_14 : f32 to vector<4x256xf32>
      %35 = arith.select %33, %12, %34 : vector<4x256xi1>, vector<4x256xf32>
      %36 = tpu.iota {dimensions = array<i32: 0>} : vector<16x256xi32>
      %37 = vector.broadcast %16 : vector<1x256xi32> to vector<16x256xi32>
      %38 = arith.cmpi eq, %36, %37 : vector<16x256xi32>
      %cst_15 = arith.constant 0.000000e+00 : f32
      %39 = vector.shape_cast %29 : vector<1x256xf32> to vector<1x256xf32>
      %40 = vector.broadcast %39 : vector<1x256xf32> to vector<16x256xf32>
      %41 = vector.broadcast %cst_15 : f32 to vector<16x256xf32>
      %42 = arith.select %38, %40, %41 : vector<16x256xi1>, vector<16x256xf32>
      %c8_i32 = arith.constant 8 : i32
      %43 = vector.broadcast %c8_i32 : i32 to vector<1x256xi32>
      %44 = arith.addi %16, %43 : vector<1x256xi32>
      %45 = vector.broadcast %44 : vector<1x256xi32> to vector<16x256xi32>
      %46 = arith.cmpi eq, %36, %45 : vector<16x256xi32>
      %cst_16 = arith.constant 0.000000e+00 : f32
      %47 = vector.shape_cast %31 : vector<1x256xf32> to vector<1x256xf32>
      %48 = vector.broadcast %47 : vector<1x256xf32> to vector<16x256xf32>
      %49 = vector.broadcast %cst_16 : f32 to vector<16x256xf32>
      %50 = arith.select %46, %48, %49 : vector<16x256xi1>, vector<16x256xf32>
      %51 = arith.addf %42, %50 : vector<16x256xf32>
      %c0_17 = arith.constant 0 : index
      %c0_18 = arith.constant 0 : index
      %52 = vector.load %arg3[%c0_17, %c0_18] : memref<16x4xf32, #tpu.memory_space<vmem>>, vector<16x4xf32>
      %cst_19 = arith.constant dense<0.000000e+00> : vector<16x4xf32>
      %53 = tpu.matmul %51, %35, %cst_19 {dimension_numbers = #tpu.dot_dimension_numbers<[1], [1], [0], [0], [0, 0, 1, 0], [], []>} : vector<16x256xf32>, vector<4x256xf32>, vector<16x4xf32> -> vector<16x4xf32>
      %54 = arith.addf %52, %53 : vector<16x4xf32>
      %c0_20 = arith.constant 0 : index
      %c0_21 = arith.constant 0 : index
      %55 = vector.load %arg3[%c0_20, %c0_21] : memref<16x4xf32, #tpu.memory_space<vmem>>, vector<16x4xf32>
      tpu.vector_store %arg3[%c0_20, %c0_21], %54 {strides = array<i32>} : memref<16x4xf32, #tpu.memory_space<vmem>>, vector<16x4xf32>,
    } else {
    }
    %c2_i32_4 = arith.constant 2 : i32
    %9 = arith.cmpi eq, %arg0, %c2_i32_4 : i32
    %10 = arith.extui %9 : i1 to i32
    %c0_i32_5 = arith.constant 0 : i32
    %11 = arith.cmpi ne, %10, %c0_i32_5 : i32
    scf.if %11 {
      %c0 = arith.constant 0 : index
      %c0_6 = arith.constant 0 : index
      %12 = vector.load %arg3[%c0, %c0_6] : memref<16x4xf32, #tpu.memory_space<vmem>>, vector<16x4xf32>
      %13 = vector.extract_strided_slice %12 {offsets = [0, 0], sizes = [16, 3], strides = [1, 1]} : vector<16x4xf32> to vector<16x3xf32>
      %14 = vector.extract_strided_slice %12 {offsets = [0, 3], sizes = [16, 1], strides = [1, 1]} : vector<16x4xf32> to vector<16x1xf32>
      %cst = arith.constant 1.000000e-10 : f32
      %15 = vector.broadcast %cst : f32 to vector<16x1xf32>
      %16 = arith.addf %14, %15 : vector<16x1xf32>
      %17 = vector.broadcast %16 : vector<16x1xf32> to vector<16x3xf32>
      %18 = arith.divf %13, %17 : vector<16x3xf32>
      %19 = vector.extract_strided_slice %18 {offsets = [0, 0], sizes = [8, 3], strides = [1, 1]} : vector<16x3xf32> to vector<8x3xf32>
      %20 = vector.extract_strided_slice %18 {offsets = [8, 0], sizes = [8, 3], strides = [1, 1]} : vector<16x3xf32> to vector<8x3xf32>
      %21 = arith.subf %19, %20 : vector<8x3xf32>
      %22 = arith.mulf %21, %21 : vector<8x3xf32>
      %cst_7 = arith.constant dense<0.000000e+00> : vector<8xf32>
      %23 = vector.multi_reduction <add>, %22, %cst_7 [1] : vector<8x3xf32> to vector<8xf32>
      %24 = vector.shape_cast %23 : vector<8xf32> to vector<8x1xf32>
      %cst_8 = arith.constant dense<0.000000e+00> : vector<1xf32>
      %25 = vector.multi_reduction <add>, %24, %cst_8 [0] : vector<8x1xf32> to vector<1xf32>
      %26 = vector.shape_cast %25 : vector<1xf32> to vector<1x1xf32>
      %27 = math.sqrt %26 : vector<1x1xf32>
      %c0_9 = arith.constant 0 : index
      %c0_10 = arith.constant 0 : index
      %28 = vector.load %arg2[%c0_9, %c0_10] : memref<1x1xf32, #tpu.memory_space<vmem>>, vector<1x1xf32>
      tpu.vector_store %arg2[%c0_9, %c0_10], %27 {strides = array<i32>} : memref<1x1xf32, #tpu.memory_space<vmem>>, vector<1x1xf32>,
    } else {
    }
    return
  }
  func.func @transform_0(%arg0: i32) -> (i32, i32) {
    %c0_i32 = arith.constant 0 : i32
    %c0_i32_0 = arith.constant 0 : i32
    return %c0_i32, %arg0 : i32, i32
  }
  func.func @transform_1(%arg0: i32) -> (i32, i32) {
    %c0_i32 = arith.constant 0 : i32
    %c0_i32_0 = arith.constant 0 : i32
    %c0_i32_1 = arith.constant 0 : i32
    return %c0_i32, %c0_i32_0 : i32, i32
  }
}

</mosaic_0001>

<bundles_post_ra>
// kernel: tpu_custom_call.1
= control target key start
LH: loop header
LB: loop body
LE: loop exit
PB: predicated region body
PF: predicated region fallthrough
CT: control target
= control target key end

     0   :  { %6 = vsyncpa [#allocation4], 0  ;;  %s847_s0 = inlined_call_operand.hbm [shape: f32[7,600], index: 0, kind: input, shape index: {}]   ;;  %s848_s1 = inlined_call_operand.hbm [shape: f32[1,1], index: 1, kind: output, shape index: {}]  }
   0x1   :  { %8 = vsyncpa [#allocation4 + $0x1], 0 }
   0x2   :  { %9 = vsyncpa [#allocation5], 0  ;;  %s723_s6 = smov 0   ;;  %s725_s7 = smov 0  }
   0x3   :  { %s727_s8 = smov 0   ;;  %s729_s9 = smov 0  }
   0x4 LB: > { %s742_s10 = sadd.s32 4294967295, %s705_s9   ;;  %s745_s11 = sadd.s32 1, %s705_s9   ;;  %s705_s9 = sphi %s729_s9, %s854_s9   ;;  %s701_s8 = sphi %s727_s8, %s853_s8   ;;  %s697_s7 = sphi %s725_s7, %s852_s7   ;;  %s693_s6 = sphi %s723_s6, %s851_s6  }
   0x5   : > { %s19_s12 = ssub.s32 %s705_s9, %s745_s11  ;;  %s22_s13 = sadd.s32 1, %s701_s8 }
   0x6   : > { %p20_p0 = scmp.eq.s32.totalorder %s19_s12, 0  ;;  %p29_p1 = scmp.ne.s32.totalorder %s701_s8, %s697_s7 }
   0x7   : > { %p30_p2 = scmp.eq.s32.totalorder %s705_s9, 0  ;;  %p35_p3 = scmp.ne.s32.totalorder %s697_s7, %s693_s6 }
   0x8   : > { %s755_s14 = scalar_select %p20_p0, %s701_s8, %s22_s13  }
   0x9   : > { %p31_p4 = por %p30_p2, %p29_p1  ;;  %p36_p5 = scmp.eq.s32.totalorder %s742_s10, 0 }
   0xa   : > { %p508_p7 = scmp.ge.s32.totalorder %s705_s9, 3 }
   0xb   : > { %p758_p6 = por %p36_p5, %p35_p3 }
   0xc   : > { %76 = sbr.rel (%p508_p7) target bundleno = 52 (0x34), region = 16 }
  0x11   : > { %79 = sbr.rel (!%p31_p4) target bundleno = 52 (0x34), region = 20  ;;  %s80_s16 = sand.u32 (%p31_p4), 1, %s701_s8  }
  0x12   : > { %s510_s17 = sshll.u32 (%p31_p4), %s705_s9, 1  ;;  %s509_s18 = sshll.u32 (%p31_p4), %s80_s16, 4 }
  0x13   : > { %s86_s19 = ssub.s32 (%p31_p4), 5, %s510_s17  ;;  %s768_s23 = scalar_lea.sflag (%p31_p4), [#allocation4], %s80_s16 }
  0x14   : > { %p87_p8 = scmp.lt.s32.totalorder (%p31_p4), %s86_s19, 2  ;;  %s84_s24 = scalar_lea.vmem (%p31_p4), [#allocation3], %s509_s18 }
  0x16   : > { %s856_s19 = smov (!%p87_p8, %s86_s19), 2 }
  0x17   : > { %s511_s20 = sshll.u32 %s856_s19, 3 }
  0x18   : > { %s90_s21 = ssub.s32 16, %s511_s20 }
  0x19   : > { %s91_s22 = sshll.u32 %s90_s21, 4 }
  0x1a   : > { %92 = vsyncadd %s768_s23, %s91_s22  ;;  %p771_p9 = scmp.ne.s32.totalorder %s511_s20, 0  ;;  %s534_s26 = sshll.u32 %s705_s9, 4 }
  0x1b   : > { %s95_s29 = scalar_lea.hbm %s847_s0, %s534_s26  ;;  %s515_s30 = sshll.u32 %s856_s19, 7 }
  0x1c   : > { %s98_s2 = sshll.u32 %s95_s29, 4  ;;  %s780_s3 = sshll.u32 %s84_s24, 4  ;;  %s99_s2 = int_to_ptr.hbm [resolvable:$true] %s98_s2  ;;  %s101_s3 = int_to_ptr.vmem [resolvable:$true] %s780_s3 }
  0x1d   : > { %s600_s4 = sshra.s32 %s99_s2, 4  ;;  %s602_s5 = sshrl.u32 %s515_s30, 4  ;;  %s601_s4 = int_to_ptr.hbm [resolvable:$true] %s600_s4 }
  0x1e   : > { %s607_s6 = scalar_lea.hbm %s601_s4, %s602_s5  ;;  %s611_s16 = scalar_lea.hbm %s847_s0, 40 }
  0x1f   : > { %p608_p10 = scmp.ne.s32.totalorder %s601_s4, %s607_s6  ;;  %p612_p13 = scmp.lt.s32.totalorder %s601_s4, %s847_s0 }
  0x20   : > { %p613_p0 = scmp.lt.s32.totalorder %s611_s16, %s607_s6 }
  0x21   : > { %p609_p11 = pnand %p608_p10, %p771_p9 }
  0x22   : > { %p614_p1 = por %p613_p0, %p612_p13 }
  0x23   : > { %p610_p12 = pneg %p609_p11 }
  0x25   : > { %p615_p2 = pnand %p614_p1, %p610_p12 }
  0x27   : > { %618 = shalt.err (!%p615_p2)
}
  0x28   : > { %s619_s20 = sshra.s32 %s101_s3, 4  ;;  %s707_s22 = smov [#allocation3]   ;;  %s620_s20 = int_to_ptr.vmem [resolvable:$true] %s619_s20 }
  0x29   : > { %s626_s21 = scalar_lea.vmem %s620_s20, %s602_s5  ;;  %s630_s24 = scalar_lea.vmem %s707_s22, 32 }
  0x2a   : > { %p627_p3 = scmp.ne.s32.totalorder %s620_s20, %s626_s21  ;;  %p632_p7 = scmp.lt.s32.totalorder %s630_s24, %s626_s21 }
  0x2c   : > { %p628_p4 = pnand %p627_p3, %p771_p9 }
  0x2e   : > { %p629_p5 = pneg %p628_p4 }
  0x30   : > { %p634_p8 = pnand %p632_p7, %p629_p5 }
  0x32   : > { %637 = shalt.err (!%p634_p8)
}
  0x33   : > { %103 = dma.hbm_to_vmem [thread:$0]  (%p771_p9), %s99_s2, %s515_s30, %s101_s3, %s768_s23  }
  0x34 PF: > { %p516_p10 = scmp.ge.s32.totalorder %s705_s9, 1  ;;  %p105_p11 = scmp.lt.s32.totalorder %s705_s9, 4 }
  0x36   : > { %p106_p12 = pnand %p516_p10, %p105_p11 }
  0x37   : > { %s111_s26 = sand.u32 (!%p106_p12), 1, %s697_s7  }
  0x38   : > { %109 = sbr.rel (%p106_p12) target bundleno = 698 (0x2ba), region = 24  ;;  %s517_s27 = sshll.u32 (!%p106_p12), %s111_s26, 4 }
  0x39   : > { %s112_s28 = scalar_lea.sflag (!%p106_p12), [#allocation4], %s111_s26  ;;  %s803_s29 = scalar_lea.vmem (!%p106_p12), [#allocation3], %s517_s27 }
  0x3d   : > { %684 = dma.done.wait (%p758_p6), %s112_s28, 256  }
  0x3e   : > { %686 = vsyncadd (%p758_p6), %s112_s28, 4294967040  ;;  %p518_p9 = scmp.ne.s32.totalorder %s742_s10, 0 }
  0x40   : > { %138 = sbr.rel (%p518_p9) target bundleno = 72 (0x48), region = 32 }
  0x45   : > { %vm139_vm0 = vcmask 31744   ;;  %v708_v0 = vmov 0.0  }
  0x46   : > { %140 = vst.msk [vmem:[#allocation2] sm:$0xff] %vm139_vm0, %v708_v0 }
  0x47   : > { %141 = vst.msk [vmem:[#allocation2 + $0x8] sm:$0xff] %vm139_vm0, %v708_v0 }
  0x48 PF: > { %p519_p13 = scmp.eq.s32.totalorder %s742_s10, 2 }
  0x4a   : > { %145 = sbr.rel (%p519_p13) target bundleno = 232 (0xe8), region = 36 }
  0x4f   : > { %v146_v1 = vld [vmem:[%s803_s29] sm:$0xf]  ;;  %v147_v2 = vld [vmem:[%s803_s29 + $0x8] sm:$0xf]  ;;  %v157_v3 = vlaneseq  ;;  %v709_v9 = vmov 0.0   ;;  %vm245_vm11 = vcmask 31744  }
  0x50   : > { %535 = vmatpush.xpose.msra.mxu2 %v146_v1  ;;  %536 = vmatpush.xpose.msra.mxu3 %v147_v2  ;;  %v521_v4 = vld [vmem:[%s803_s29 + $0x5] ss:$8 sm:$0x3]  ;;  %v522_v5 = vld [vmem:[%s803_s29 + $0x6] ss:$8 sm:$0x3] }
  0x51   : > { %vm155_vm1 = vcmp.eq.f32.partialorder %v521_v4, 1.0  ;;  %v158_v6 = vshrl.u32 %v157_v3, 7  ;;  %212 = vmatpush.xpose.msra.mxu0 %v146_v1  ;;  %235 = vmatpush.xpose.msra.mxu1 %v147_v2  ;;  %vm539_vm2 = vcmp.lt.s32.totalorder %v522_v5, 0  ;;  %v540_v7 = vceil.f32 %v522_v5  ;;  %v520_v12 = vld [vmem:[%s803_s29 + $0x4] ss:$8 sm:$0x3] }
  0x52   : > { %v541_v8 = vfloor.f32 %v522_v5  ;;  %v156_v10 = vsel %vm155_vm1, 1.0, %v709_v9  ;;  %v183_v20 = vperm.slane %v520_v12, 0  ;;  %v184_v21 = vperm.slane %v520_v12, 1  ;;  %v195_v37 = vld [vmem:[#allocation2] sm:$0xff]  ;;  %v196_v42 = vld [vmem:[#allocation2 + $0x8] sm:$0xff] }
  0x53   : > { %v159_v14 = vadd.s32 8, %v158_v6  ;;  %v167_v15 = vperm.slane %v156_v10, 0  ;;  %v168_v16 = vperm.slane %v156_v10, 1 }
  0x54   : > { %v542_v11 = vsel %vm539_vm2, %v540_v7, %v541_v8 }
  0x55   : > { %v543_v13 = vcvt.f32.s32 %v542_v11 }
  0x57   : > { %v160_v17 = vperm.slane %v543_v13, 0  ;;  %v175_v18 = vadd.s32 8, %v543_v13  ;;  %v161_v19 = vperm.slane %v543_v13, 1 }
  0x59   : > { %vm164_vm3 = vcmp.eq.s32.totalorder %v159_v14, %v160_v17  ;;  %v176_v22 = vperm.slane %v175_v18, 0  ;;  %vm165_vm4 = vcmp.eq.s32.totalorder %v159_v14, %v161_v19  ;;  %v177_v23 = vperm.slane %v175_v18, 1 }
  0x5a   : > { %v173_v24 = vsel %vm164_vm3, %v167_v15, 0.0  ;;  %v174_v25 = vsel %vm165_vm4, %v168_v16, 0.0  ;;  %vm162_vm5 = vcmp.eq.s32.totalorder %v158_v6, %v160_v17  ;;  %vm163_vm6 = vcmp.eq.s32.totalorder %v158_v6, %v161_v19 }
  0x5b   : > { %vm180_vm7 = vcmp.eq.s32.totalorder %v159_v14, %v176_v22  ;;  %vm181_vm8 = vcmp.eq.s32.totalorder %v159_v14, %v177_v23  ;;  %v171_v26 = vsel %vm162_vm5, %v167_v15, 0.0  ;;  %vm178_vm9 = vcmp.eq.s32.totalorder %v158_v6, %v176_v22 }
  0x5c   : > { %v189_v27 = vsel %vm180_vm7, %v183_v20, 0.0  ;;  %v190_v28 = vsel %vm181_vm8, %v184_v21, 0.0  ;;  %v187_v29 = vsel %vm178_vm9, %v183_v20, 0.0  ;;  %v172_v30 = vsel %vm163_vm6, %v168_v16, 0.0 }
  0x5d   : > { %v193_v31 = vadd.f32 %v189_v27, %v173_v24  ;;  %v194_v32 = vadd.f32 %v190_v28, %v174_v25  ;;  %v191_v33 = vadd.f32 %v187_v29, %v171_v26  ;;  %vm179_vm10 = vcmp.eq.s32.totalorder %v158_v6, %v177_v23 }
  0x5e   : > { %v188_v34 = vsel %vm179_vm10, %v184_v21, 0.0 }
  0x5f   : > { %216 = vmatmul.f32.vlgmr.msra.gmra.mxu2 %v193_v31  ;;  %239 = vmatmul.f32.vlgmr.msra.gmra.mxu3 %v194_v32  ;;  %v192_v35 = vadd.f32 %v188_v34, %v172_v30 }
  0x60   : > { %213 = vmatmul.f32.vlgmr.msra.gmra.mxu0 %v191_v33 }
  0x61   : > { %236 = vmatmul.f32.vlgmr.msra.gmra.mxu1 %v192_v35 }
  0xdd   : > { %v214_v36 = vpop.f32.mrf.mxu0 }
  0xde   : > { %v237_v38 = vpop.f32.mrf.mxu1 }
  0xdf   : > { %v238_v39 = vadd.f32 %v237_v38, %v214_v36 }
  0xe1   : > { %v243_v40 = vadd.f32 %v238_v39, %v195_v37 }
  0xe2   : > { %v217_v41 = vpop.f32.mrf.mxu2  ;;  %v240_v43 = vpop.f32.mrf.mxu3 }
  0xe3   : > { %246 = vst.msk [vmem:[#allocation2] sm:$0xff] %vm245_vm11, %v243_v40  ;;  %v241_v44 = vadd.f32 %v240_v43, %v217_v41 }
  0xe5   : > { %v244_v45 = vadd.f32 %v241_v44, %v196_v42 }
  0xe7   : > { %247 = vst.msk [vmem:[#allocation2 + $0x8] sm:$0xff] %vm245_vm11, %v244_v45 }
  0xe8 PF: > { %p523_p6 = scmp.ne.s32.totalorder %s742_s10, 2 }
  0xe9   : > { %s527_s9 = sshll.u32 (!%p523_p6), %s742_s10, 8 }
  0xea   : > { %251 = sbr.rel (%p523_p6) target bundleno = 693 (0x2b5), region = 40 }
  0xef   : > { %v263_v46 = vlaneseq  ;;  %v267_v47 = vstv %s527_s9  ;;  %v524_v48 = vld [vmem:[%s803_s29 + $0x4] ss:$8 sm:$0x3]  ;;  %v525_v49 = vld [vmem:[%s803_s29 + $0x5] ss:$8 sm:$0x3] }
  0xf0   : > { %v526_v52 = vld [vmem:[%s803_s29 + $0x6] ss:$8 sm:$0x3]  ;;  %vm261_vm12 = vcmp.eq.f32.partialorder %v525_v49, 1.0  ;;  %v710_v55 = vmov 0.0   ;;  %v280_v61 = vperm.slane %v524_v48, 0 }
  0xf1   : > { %v264_v50 = vand.u32 127, %v263_v46  ;;  %v293_v51 = vshrl.u32 %v263_v46, 7  ;;  %vm544_vm13 = vcmp.lt.s32.totalorder %v526_v52, 0  ;;  %v545_v53 = vceil.f32 %v526_v52  ;;  %v252_v57 = vld [vmem:[%s803_s29] sm:$0xf]  ;;  %v325_v37 = vld [vmem:[#allocation2 + $0x8] sm:$0xff] }
  0xf2   : > { %v546_v54 = vfloor.f32 %v526_v52  ;;  %v262_v56 = vsel %vm261_vm12, 1.0, %v710_v55  ;;  %v281_v0 = vperm.slane %v524_v48, 1  ;;  %v253_v1 = vld [vmem:[%s803_s29 + $0x8] sm:$0xf]  ;;  %v711_v30 = vmov 3   ;;  %v324_v32 = vld [vmem:[#allocation2] sm:$0xff] }
  0xf3   : > { %v268_v58 = vadd.s32 %v267_v47, %v264_v50  ;;  %v265_v59 = vadd.s32 128, %v264_v50  ;;  %v273_v60 = vperm.slane %v262_v56, 0  ;;  %v274_v63 = vperm.slane %v262_v56, 1  ;;  %593 = vset.pattern.permute.xlu0 %v711_v30 }
  0xf4   : > { %v547_v62 = vsel %vm544_vm13, %v545_v53, %v546_v54  ;;  %v294_v6 = vadd.s32 8, %v293_v51  ;;  %vm374_vm8 = vcmask 31744  }
  0xf5   : > { %vm270_vm14 = vcmp.lt.s32.totalorder %v268_v58, 600  ;;  %v269_v2 = vadd.s32 %v267_v47, %v265_v59  ;;  %v548_v3 = vcvt.f32.s32 %v547_v62 }
  0xf6   : > { %528 = vmatpush.xpose.msk.msra.mxu0 %vm270_vm14, %v252_v57  ;;  %537 = vmatpush.xpose.msk.msra.mxu2 %vm270_vm14, %v252_v57  ;;  %v277_v4 = vsel %vm270_vm14, %v273_v60, 0.0  ;;  %v284_v5 = vsel %vm270_vm14, %v280_v61, 0.0 }
  0xf7   : > { %vm271_vm15 = vcmp.lt.s32.totalorder %v269_v2, 600  ;;  %v295_v7 = vperm.slane %v548_v3, 0  ;;  %v301_v8 = vperm.slane %v277_v4, 0  ;;  %v307_v9 = vadd.s32 8, %v548_v3 }
  0xf8   : > { %529 = vmatpush.xpose.msk.msra.mxu1 %vm271_vm15, %v253_v1  ;;  %538 = vmatpush.xpose.msk.msra.mxu3 %vm271_vm15, %v253_v1  ;;  %v314_v10 = vperm.slane %v284_v5, 0  ;;  %v278_v11 = vsel %vm271_vm15, %v274_v63, 0.0  ;;  %v285_v12 = vsel %vm271_vm15, %v281_v0, 0.0  ;;  %v296_v13 = vperm.slane %v548_v3, 1 }
  0xf9   : > { %vm297_vm0 = vcmp.eq.s32.totalorder %v293_v51, %v295_v7  ;;  %v308_v14 = vperm.slane %v307_v9, 0  ;;  %v302_v15 = vperm.slane %v278_v11, 0  ;;  %v309_v16 = vperm.slane %v307_v9, 1 }
  0xfa   : > { %v303_v17 = vsel %vm297_vm0, %v301_v8, 0.0  ;;  %vm298_vm1 = vcmp.eq.s32.totalorder %v293_v51, %v296_v13  ;;  %v315_v18 = vperm.slane %v285_v12, 0  ;;  %vm299_vm2 = vcmp.eq.s32.totalorder %v294_v6, %v295_v7 }
  0xfb   : > { %vm310_vm3 = vcmp.eq.s32.totalorder %v293_v51, %v308_v14  ;;  %v304_v19 = vsel %vm298_vm1, %v302_v15, 0.0  ;;  %vm311_vm4 = vcmp.eq.s32.totalorder %v293_v51, %v309_v16  ;;  %v305_v20 = vsel %vm299_vm2, %v301_v8, 0.0 }
  0xfc   : > { %v316_v21 = vsel %vm310_vm3, %v314_v10, 0.0  ;;  %v317_v22 = vsel %vm311_vm4, %v315_v18, 0.0  ;;  %vm312_vm5 = vcmp.eq.s32.totalorder %v294_v6, %v308_v14  ;;  %vm300_vm6 = vcmp.eq.s32.totalorder %v294_v6, %v296_v13 }
  0xfd   : > { %v320_v23 = vadd.f32 %v316_v21, %v303_v17  ;;  %v321_v24 = vadd.f32 %v317_v22, %v304_v19  ;;  %v318_v25 = vsel %vm312_vm5, %v314_v10, 0.0  ;;  %v306_v26 = vsel %vm300_vm6, %v302_v15, 0.0 }
  0xfe   : > { %v322_v27 = vadd.f32 %v318_v25, %v305_v20  ;;  %vm313_vm7 = vcmp.eq.s32.totalorder %v294_v6, %v309_v16  ;;  %vm423_vm1 = vcmask 23552   ;;  %vm445_vm2 = vcmask 0  }
  0xff   : > { %342 = vmatmul.f32.vlgmr.msra.gmra.mxu0 %v320_v23  ;;  %365 = vmatmul.f32.vlgmr.msra.gmra.mxu1 %v321_v24  ;;  %v319_v28 = vsel %vm313_vm7, %v315_v18, 0.0 }
 0x100   : > { %345 = vmatmul.f32.vlgmr.msra.gmra.mxu2 %v322_v27  ;;  %v323_v29 = vadd.f32 %v319_v28, %v306_v26 }
 0x102   : > { %368 = vmatmul.f32.vlgmr.msra.gmra.mxu3 %v323_v29 }
 0x17c   : > { %v343_v31 = vpop.f32.mrf.mxu0  ;;  %v366_v33 = vpop.f32.mrf.mxu1 }
 0x17d   : > { %v367_v34 = vadd.f32 %v366_v33, %v343_v31 }
 0x17f   : > { %v372_v35 = vadd.f32 %v367_v34, %v324_v32 }
 0x181   : > { %375 = vst.msk [vmem:[#allocation2] sm:$0xff] %vm374_vm8, %v372_v35 }
 0x183   : > { %v346_v36 = vpop.f32.mrf.mxu2 }
 0x185   : > { %v369_v38 = vpop.f32.mrf.mxu3 }
 0x186   : > { %v370_v39 = vadd.f32 %v369_v38, %v346_v36 }
 0x188   : > { %v373_v40 = vadd.f32 %v370_v39, %v325_v37  ;;  %v377_v41 = vld [vmem:[#allocation2] sm:$0xff] }
 0x189   : > { %v379_v42 = vadd.f32 1e-10, %v377_v41 }
 0x18a   : > { %376 = vst.msk [vmem:[#allocation2 + $0x8] sm:$0xff] %vm374_vm8, %v373_v40 }
 0x18b   : > { %383 = vperm.xlu0 %593, %v379_v42  }
 0x191   : > { %v378_v43 = vld [vmem:[#allocation2 + $0x8] sm:$0xff] }
 0x192   : > { %v380_v44 = vadd.f32 1e-10, %v378_v43 }
 0x194   : > { %388 = vperm.xlu0 %593, %v380_v44  }
 0x1fd   : > { %v384_v45 = vpop.permute.xlu0 %383 }
 0x1fe   : > { %594 = vrcp.f32 %v384_v45  ;;  %v402_v54 = vand.u32 2147483648, %v384_v45  ;;  %vm396_vm10 = vweird.f32 %v384_v45  ;;  %v400_v56 = vand.u32 2147483647, %v384_v45 }
 0x200   : > { %v403_v61 = vor.u32 1.1754944e-38, %v402_v54  ;;  %vm401_vm14 = vcmp.eq.f32.partialorder %v400_v56, 8.507059e+37 }
 0x204   : > { %v595_v46 = vpop.eup %594 }
 0x205   : > { %v392_v47 = vmul.f32 %v595_v46, %v384_v45  ;;  %vm397_vm9 = vweird.f32 %v595_v46 }
 0x206   : > { %v389_v48 = vpop.permute.xlu0 %388  ;;  %vm398_vm11 = vmor %vm396_vm10, %vm397_vm9 }
 0x207   : > { %v393_v49 = vsub.f32 1.0, %v392_v47  ;;  %596 = vrcp.f32 %v389_v48  ;;  %v417_v57 = vand.u32 2147483648, %v389_v48  ;;  %v415_v59 = vand.u32 2147483647, %v389_v48 }
 0x208   : > { %vm411_vm13 = vweird.f32 %v389_v48 }
 0x209   : > { %v394_v50 = vmul.f32 %v595_v46, %v393_v49  ;;  %v418_v63 = vor.u32 1.1754944e-38, %v417_v57  ;;  %vm416_vm0 = vcmp.eq.f32.partialorder %v415_v59, 8.507059e+37 }
 0x20b   : > { %v395_v53 = vadd.f32 %v595_v46, %v394_v50 }
 0x20d   : > { %v597_v51 = vpop.eup %596  ;;  %v399_v60 = vsel %vm398_vm11, %v595_v46, %v395_v53 }
 0x20e   : > { %v407_v52 = vmul.f32 %v597_v51, %v389_v48  ;;  %vm412_vm12 = vweird.f32 %v597_v51  ;;  %v404_v0 = vsel %vm401_vm14, %v403_v61, %v399_v60 }
 0x20f   : > { %vm413_vm15 = vmor %vm411_vm13, %vm412_vm12  ;;  %v405_v3 = vmul.f32 %v404_v0, %v377_v41 }
 0x210   : > { %v408_v55 = vsub.f32 1.0, %v407_v52 }
 0x212   : > { %v409_v58 = vmul.f32 %v597_v51, %v408_v55 }
 0x214   : > { %v410_v62 = vadd.f32 %v597_v51, %v409_v58 }
 0x216   : > { %v414_v1 = vsel %vm413_vm15, %v597_v51, %v410_v62 }
 0x217   : > { %v419_v2 = vsel %vm416_vm0, %v418_v63, %v414_v1 }
 0x218   : > { %v420_v4 = vmul.f32 %v419_v2, %v378_v43 }
 0x21a   : > { %v421_v5 = vsub.f32 %v405_v3, %v420_v4 }
 0x21c   : > { %v422_v6 = vmul.f32 %v421_v5, %v421_v5 }
 0x21e   : > { %v424_v7 = vsel %vm423_vm1, %v422_v6, 0.0 }
 0x21f   : > { %425 = vadd.xlane.f32.xlu1 %v424_v7 }
 0x292   : > { %v426_v8 = vpop.xlane.xlu1 %425 }
 0x293   : > { %v427_v9 = vrot.slane %v426_v8, 4 }
 0x295   : > { %v428_v10 = vadd.f32 %v427_v9, %v426_v8 }
 0x297   : > { %v429_v11 = vrot.slane %v428_v10, 2 }
 0x299   : > { %v430_v12 = vadd.f32 %v429_v11, %v428_v10 }
 0x29b   : > { %v431_v13 = vrot.slane %v430_v12, 1 }
 0x29d   : > { %v432_v14 = vadd.f32 %v431_v13, %v430_v12 }
 0x29f   : > { %598 = vrsqrt.f32 %v432_v14  ;;  %vm440_vm3 = vcmp.eq.f32.partialorder %v432_v14, inf  ;;  %v443_v22 = vand.u32 2147483648, %v432_v14  ;;  %vm442_vm4 = vcmp.eq.f32.partialorder %v432_v14, 0.0 }
 0x2a5   : > { %v599_v15 = vpop.eup %598 }
 0x2a6   : > { %v434_v16 = vmul.f32 %v599_v15, %v432_v14 }
 0x2a8   : > { %v435_v17 = vmul.f32 %v599_v15, %v434_v16 }
 0x2aa   : > { %v436_v18 = vmul.f32 0.5, %v435_v17 }
 0x2ac   : > { %v437_v19 = vsub.f32 1.5, %v436_v18 }
 0x2ae   : > { %v438_v20 = vmul.f32 %v599_v15, %v437_v19 }
 0x2b0   : > { %v439_v21 = vmul.f32 %v438_v20, %v432_v14 }
 0x2b2   : > { %v441_v23 = vsel %vm440_vm3, %v432_v14, %v439_v21 }
 0x2b3   : > { %v444_v24 = vsel %vm442_vm4, %v443_v22, %v441_v23 }
 0x2b4   : > { %446 = vst.msk [vmem:[#allocation6] sm:$0x1] %vm445_vm2, %v444_v24 }
 0x2b5 PF: > { %s455_s23 = sshll.u32 %s848_s1, 4  ;;  %s712_s25 = smov [#allocation6]   ;;  %s456_s23 = int_to_ptr.hbm [resolvable:$true] %s455_s23 }
 0x2b6   : > { %s453_s30 = sshll.u32 %s712_s25, 4  ;;  %s454_s30 = int_to_ptr.vmem [resolvable:$true] %s453_s30 }
 0x2b7   : > { %551 = dma.vmem_to_hbm [thread:$0]  (%p519_p13), %s454_s30, 16, %s456_s23, [#allocation5]  }
 0x2b8   : > { %688 = dma.done.wait (%p519_p13), [#allocation5], 16  }
 0x2b9   : > { %690 = vsyncadd (%p519_p13), [#allocation5], 4294967280 }
 0x2ba PF: > { %p12_p0 = scmp.ge.s32.totalorder %s745_s11, 5   ;;  %s851_s6 = smov %s697_s7 }
 0x2bb   : > { %s852_s7 = smov %s701_s8  ;;  %s853_s8 = smov %s755_s14 }
 0x2bc   : > { %s854_s9 = smov %s745_s11  ;;  %14 = sbr.rel (!%p12_p0) target bundleno = 4 (0x4), region = 79 }
 0x2c1   :  { %469 = vsyncpa [#allocation4], 1 }
 0x2c2   :  { %471 = vsyncpa [#allocation4 + $0x1], 1 }
 0x2c3   :  { %472 = vsyncpa [#allocation5], 1 }
 0x2c4   :  { %474 = vsyncpa [#allocation5 + $0x1], 1 }

</bundles_post_ra>
